<compile_context>
chip_gen: v6e
topology: v6e:2x2x1
jax: 0.10.0
libtpu: 0.0.40
codegen_flags: <defaults>
</compile_context>

<pallas_src>
import jax
import jax.numpy as jnp
from jax.experimental import pallas as pl
from jax.experimental.pallas import tpu as pltpu

STATE_DIM = 10
HIDDEN = 128
BOOST_LEVELS = 4
TBOOST = 0.3

CHUNK = 256            # rows per in-kernel chunk: (256,128) f32 hidden = 32 vregs (no spill)
SMALL_CUTOFF = 512     # no-grid whole-array path at or below this batch size
MAX_BATCH_TILE = 8192  # ~450 KB of tile traffic per grid step >> 0.35 us fixed step overhead


def _round_up(x, m):
    return ((x + m - 1) // m) * m


def _cost_estimate(batch):
    matmul_flops = 2 * batch * (STATE_DIM * HIDDEN + HIDDEN * BOOST_LEVELS)
    softmax_flops = 6 * batch * BOOST_LEVELS
    bytes_accessed = 4 * (
        batch * (STATE_DIM + BOOST_LEVELS)
        + STATE_DIM * HIDDEN + HIDDEN
        + HIDDEN * BOOST_LEVELS + BOOST_LEVELS
    )
    return pl.CostEstimate(
        flops=matmul_flops + softmax_flops,
        transcendentals=batch * BOOST_LEVELS,
        bytes_accessed=bytes_accessed,
    )


def _mlp_softmax(x, w1, b1, w2, b2):
    """x:(n,10) w1:(10,128) b1:(1,128) w2:(128,4) b2:(1,4) -> softmax probs (n,4) f32."""
    h = jnp.dot(x, w1, preferred_element_type=jnp.float32) + b1
    h = jnp.maximum(h, 0.0)
    logits = jnp.dot(h, w2, preferred_element_type=jnp.float32) + b2
    scaled = logits * (1.0 / TBOOST)
    m = jnp.max(scaled, axis=-1, keepdims=True)
    e = jnp.exp(scaled - m)
    denom = jnp.sum(e, axis=-1, keepdims=True)
    # Exact reciprocal (EUP) keeps rows summing to 1 within 1e-5; approx=True would not.
    return e * pl.reciprocal(denom, approx=False)


# --------------------------- small-batch path (no grid) ---------------------------
def boost_kernel_small(x_ref, w1_ref, b1_ref, w2_ref, b2_ref, out_ref):
    out_ref[...] = _mlp_softmax(
        x_ref[...], w1_ref[...], b1_ref[...], w2_ref[...], b2_ref[...]
    ).astype(out_ref.dtype)


def _forward_small(state, w1, b1, w2, b2):
    B = state.shape[0]
    vmem = pl.BlockSpec(memory_space=pltpu.MemorySpace.VMEM)
    return pl.pallas_call(
        boost_kernel_small,
        out_shape=jax.ShapeDtypeStruct((B, BOOST_LEVELS), jnp.float32),
        in_specs=[vmem] * 5,
        out_specs=vmem,
        cost_estimate=_cost_estimate(B),
    )(
        state,
        w1.T,                              # (10, 128)  tiny one-time transpose (5 KB)
        b1.reshape(1, HIDDEN),             # (1, 128)
        w2.T,                              # (128, 4)
        b2.reshape(1, BOOST_LEVELS),       # (1, 4)
    )


# --------------------------- large-batch path (big tiles + in-kernel chunk loop) ---------------------------
def _make_tiled_kernel(total_rows, tile_rows):
    n_chunks = tile_rows // CHUNK

    def kernel(x_ref, w1_ref, b1_ref, w2_ref, b2_ref, out_ref):
        # x:(tile_rows,10)  w1:(10,128)  b1:(1,128)  w2:(128,4)  b2:(1,4)  out:(tile_rows,4)
        tile_start = pl.program_id(0) * tile_rows

        @pl.loop(0, n_chunks, unroll=True)
        def _(c):
            off = pl.multiple_of(c * CHUNK, CHUNK)

            # Skip chunks entirely past the real batch (ragged last tile).  Partially-valid
            # chunks are computed in full; rows >= total_rows are dropped by Pallas on the
            # HBM write-back of the (clipped) output block.
            @pl.when(tile_start + off < total_rows)
            def _():
                x = x_ref[pl.ds(off, CHUNK), :]
                probs = _mlp_softmax(
                    x, w1_ref[...], b1_ref[...], w2_ref[...], b2_ref[...]
                )
                out_ref[pl.ds(off, CHUNK), :] = probs.astype(out_ref.dtype)

    return kernel


def _forward_tiled(state, w1, b1, w2, b2, tb):
    B = state.shape[0]
    n_tiles = pl.cdiv(B, tb)
    return pl.pallas_call(
        _make_tiled_kernel(B, tb),
        out_shape=jax.ShapeDtypeStruct((B, BOOST_LEVELS), jnp.float32),
        grid=(n_tiles,),
        in_specs=[
            # batch tile streams with the grid (natural row-major layout, no wrapper transpose/pad)
            pl.BlockSpec((tb, STATE_DIM), lambda i: (i, 0)),
            # weights / biases: constant index_map -> fetched once, stay VMEM-resident
            pl.BlockSpec((STATE_DIM, HIDDEN), lambda i: (0, 0)),
            pl.BlockSpec((1, HIDDEN), lambda i: (0, 0)),
            pl.BlockSpec((HIDDEN, BOOST_LEVELS), lambda i: (0, 0)),
            pl.BlockSpec((1, BOOST_LEVELS), lambda i: (0, 0)),
        ],
        out_specs=pl.BlockSpec((tb, BOOST_LEVELS), lambda i: (i, 0)),
        compiler_params=pltpu.CompilerParams(
            dimension_semantics=("parallel",),   # batch tiles shard across v7x's 2 TensorCores
        ),
        cost_estimate=_cost_estimate(B),
    )(
        state,
        w1.T,                                  # (10, 128)
        b1.reshape(1, HIDDEN),                 # (1, 128)
        w2.T,                                  # (128, 4)
        b2.reshape(1, BOOST_LEVELS),           # (1, 4)
    )


def boost_module_forward(state, w1, b1, w2, b2, *,
                         max_batch_tile=MAX_BATCH_TILE, small_cutoff=SMALL_CUTOFF):
    """Forward pass of BoostModule.

    Params are in PyTorch nn.Linear layout: w1 (128,10), b1 (128,), w2 (4,128), b2 (4,).
    """
    B = state.shape[0]
    if B <= small_cutoff:
        return _forward_small(state, w1, b1, w2, b2)
    max_batch_tile = _round_up(max_batch_tile, CHUNK)
    # Always >= 2 tiles on the gridded path (v7x megacore), each tile a multiple of CHUNK
    # and as large as possible to amortize per-grid-step overhead.  VMEM use is tiny even
    # at 8192 rows (~<1 MB double-buffered), well under every generation's limit.
    tb = min(max_batch_tile, _round_up((B + 1) // 2, CHUNK))
    return _forward_tiled(state, w1, b1, w2, b2, tb)


# --------------------------- params / reference / test ---------------------------
def init_params(key):
    # nn.Linear default init: U(-1/sqrt(fan_in), 1/sqrt(fan_in)), PyTorch (out, in) layout.
    k1, k2, k3, k4 = jax.random.split(key, 4)
    bound1 = 1.0 / jnp.sqrt(STATE_DIM)
    bound2 = 1.0 / jnp.sqrt(HIDDEN)
    w1 = jax.random.uniform(k1, (HIDDEN, STATE_DIM), jnp.float32, -bound1, bound1)
    b1 = jax.random.uniform(k2, (HIDDEN,), jnp.float32, -bound1, bound1)
    w2 = jax.random.uniform(k3, (BOOST_LEVELS, HIDDEN), jnp.float32, -bound2, bound2)
    b2 = jax.random.uniform(k4, (BOOST_LEVELS,), jnp.float32, -bound2, bound2)
    return w1, b1, w2, b2


def reference_forward(state, w1, b1, w2, b2):
    h = jnp.maximum(state @ w1.T + b1, 0.0)
    logits = h @ w2.T + b2
    return jax.nn.softmax(logits / TBOOST, axis=1)


if __name__ == "__main__":
    key = jax.random.PRNGKey(0)
    pkey, k_small, k_mid, k_big = jax.random.split(key, 4)
    w1, b1, w2, b2 = init_params(pkey)

    def check(batch, xkey, tol):
        state = jax.random.normal(xkey, (batch, STATE_DIM), jnp.float32)
        out = jax.block_until_ready(boost_module_forward(state, w1, b1, w2, b2))
        ref = reference_forward(state, w1, b1, w2, b2)
        assert out.shape == (batch, BOOST_LEVELS)
        assert jnp.allclose(out, ref, atol=tol, rtol=tol), f"mismatch vs JAX reference at B={batch}"
        assert jnp.allclose(jnp.sum(out, axis=1), 1.0, atol=1e-5), f"rows must sum to 1 at B={batch}"

    # Small batch -> no-grid whole-array VMEM path.
    check(8, k_small, 1e-5)
    # Mid batch -> tiled path: tb=512, 2 grid steps, ragged last tile + a fully-skipped chunk.
    check(600, k_mid, 2e-5)
    # Larger batch -> tiled path: tb=1280, 2 grid steps, 5-chunk in-kernel loop, ragged tail.
    check(2304, k_big, 2e-5)

    print("KERNEL_OK")
</pallas_src>

<mosaic_0001>
module attributes {stable_mosaic.version = 11 : i64} {
  func.func @boost_kernel_small(%arg0: memref<8x10xf32, #tpu.memory_space<vmem>>, %arg1: memref<10x128xf32, #tpu.memory_space<vmem>>, %arg2: memref<1x128xf32, #tpu.memory_space<vmem>>, %arg3: memref<128x4xf32, #tpu.memory_space<vmem>>, %arg4: memref<1x4xf32, #tpu.memory_space<vmem>>, %arg5: memref<8x4xf32, #tpu.memory_space<vmem>>) attributes {dimension_semantics = [], scalar_prefetch = 0 : i64, scratch_operands = 0 : i64, tpu.core_type = #tpu.core_type<tc>} {
    %c0 = arith.constant 0 : index
    %c0_0 = arith.constant 0 : index
    %0 = vector.load %arg0[%c0, %c0_0] : memref<8x10xf32, #tpu.memory_space<vmem>>, vector<8x10xf32>
    %c0_1 = arith.constant 0 : index
    %c0_2 = arith.constant 0 : index
    %1 = vector.load %arg1[%c0_1, %c0_2] : memref<10x128xf32, #tpu.memory_space<vmem>>, vector<10x128xf32>
    %c0_3 = arith.constant 0 : index
    %c0_4 = arith.constant 0 : index
    %2 = vector.load %arg2[%c0_3, %c0_4] : memref<1x128xf32, #tpu.memory_space<vmem>>, vector<1x128xf32>
    %c0_5 = arith.constant 0 : index
    %c0_6 = arith.constant 0 : index
    %3 = vector.load %arg3[%c0_5, %c0_6] : memref<128x4xf32, #tpu.memory_space<vmem>>, vector<128x4xf32>
    %c0_7 = arith.constant 0 : index
    %c0_8 = arith.constant 0 : index
    %4 = vector.load %arg4[%c0_7, %c0_8] : memref<1x4xf32, #tpu.memory_space<vmem>>, vector<1x4xf32>
    %cst = arith.constant dense<0.000000e+00> : vector<8x128xf32>
    %5 = tpu.matmul %0, %1, %cst {dimension_numbers = #tpu.dot_dimension_numbers<[1], [0], [0], [1], [0, 0, 1, 1], [], []>} : vector<8x10xf32>, vector<10x128xf32>, vector<8x128xf32> -> vector<8x128xf32>
    %6 = vector.broadcast %2 : vector<1x128xf32> to vector<8x128xf32>
    %7 = arith.addf %5, %6 : vector<8x128xf32>
    %cst_9 = arith.constant 0.000000e+00 : f32
    %8 = vector.broadcast %cst_9 : f32 to vector<8x128xf32>
    %9 = arith.maximumf %7, %8 : vector<8x128xf32>
    %cst_10 = arith.constant dense<0.000000e+00> : vector<8x4xf32>
    %10 = tpu.matmul %9, %3, %cst_10 {dimension_numbers = #tpu.dot_dimension_numbers<[1], [0], [0], [1], [0, 0, 1, 1], [], []>} : vector<8x128xf32>, vector<128x4xf32>, vector<8x4xf32> -> vector<8x4xf32>
    %11 = vector.broadcast %4 : vector<1x4xf32> to vector<8x4xf32>
    %12 = arith.addf %10, %11 : vector<8x4xf32>
    %cst_11 = arith.constant 3.33333325 : f32
    %13 = vector.broadcast %cst_11 : f32 to vector<8x4xf32>
    %14 = arith.mulf %12, %13 : vector<8x4xf32>
    %cst_12 = arith.constant dense<0xFF800000> : vector<8xf32>
    %15 = vector.multi_reduction <maximumf>, %14, %cst_12 [1] : vector<8x4xf32> to vector<8xf32>
    %16 = vector.shape_cast %15 : vector<8xf32> to vector<8x1xf32>
    %17 = vector.broadcast %16 : vector<8x1xf32> to vector<8x4xf32>
    %18 = arith.subf %14, %17 : vector<8x4xf32>
    %19 = math.exp %18 : vector<8x4xf32>
    %cst_13 = arith.constant dense<0.000000e+00> : vector<8xf32>
    %20 = vector.multi_reduction <add>, %19, %cst_13 [1] : vector<8x4xf32> to vector<8xf32>
    %21 = vector.shape_cast %20 : vector<8xf32> to vector<8x1xf32>
    %22 = tpu.reciprocal %21 : vector<8x1xf32> -> vector<8x1xf32>
    %23 = vector.broadcast %22 : vector<8x1xf32> to vector<8x4xf32>
    %24 = arith.mulf %19, %23 : vector<8x4xf32>
    %c0_14 = arith.constant 0 : index
    %c0_15 = arith.constant 0 : index
    %25 = vector.load %arg5[%c0_14, %c0_15] : memref<8x4xf32, #tpu.memory_space<vmem>>, vector<8x4xf32>
    tpu.vector_store %arg5[%c0_14, %c0_15], %24 {strides = array<i32>} : memref<8x4xf32, #tpu.memory_space<vmem>>, vector<8x4xf32>,
    return
  }
}

</mosaic_0001>

<bundles_post_ra>
// kernel: tpu_custom_call.1
= control target key start
LH: loop header
LB: loop body
LE: loop exit
PB: predicated region body
PF: predicated region fallthrough
CT: control target
= control target key end

     0   :  { %vm51_vm0 = vcmask 1041408   ;;  %v292_v0 = vmov 0.0   ;;  %vm293_vm1 = vmmov 0   ;;  %vm47_vm2 = vcmask 80896   ;;  %s395_s1 = inlined_call_operand.vmem [shape: f32[10,128], index: 1, kind: input, shape index: {}]   ;;  %s396_s0 = inlined_call_operand.vmem [shape: f32[8,10], index: 0, kind: input, shape index: {}]   ;;  %s397_s3 = inlined_call_operand.vmem [shape: f32[128,4], index: 3, kind: input, shape index: {}]   ;;  %s398_s2 = inlined_call_operand.vmem [shape: f32[1,128], index: 2, kind: input, shape index: {}]   ;;  %s399_s4 = inlined_call_operand.vmem [shape: f32[1,4], index: 4, kind: input, shape index: {}]   ;;  %s400_s5 = inlined_call_operand.vmem [shape: f32[8,4], index: 5, kind: output, shape index: {}]  }
   0x1   :  { %244 = vmatprep.subr.mxu0 %v292_v0  ;;  %v22_v1 = vld [vmem:[%s395_s1 + $0x8] sm:$0x3]  ;;  %v21_v2 = vld [vmem:[%s395_s1] sm:$0xff]  ;;  %248 = vmatprep.mubr.msk.f32.mxu0 %vm293_vm1, %v292_v0  ;;  %v39_v4 = vld [vmem:[%s397_s3 + $0x78] sm:$0xff]  ;;  %vm203_vm3 = vcmask 31744  }
   0x2   :  { %245 = vmatpush3.msk.msra.mxu0 %vm51_vm0, %v22_v1  ;;  %v20_v3 = vld [vmem:[%s396_s0] sm:$0xff]  ;;  %251 = vmatprep.subr.mxu1 %v292_v0  ;;  %v38_v5 = vld [vmem:[%s397_s3 + $0x70] sm:$0xff]  ;;  %v37_v6 = vld [vmem:[%s397_s3 + $0x68] sm:$0xff] }
   0x3   :  { %246 = vmatprep.subr.mxu0 %v292_v0  ;;  %252 = vmatpush3.msra.mxu1 %v39_v4  ;;  %v36_v7 = vld [vmem:[%s397_s3 + $0x60] sm:$0xff]  ;;  %v35_v8 = vld [vmem:[%s397_s3 + $0x58] sm:$0xff]  ;;  %v34_v9 = vld [vmem:[%s397_s3 + $0x50] sm:$0xff] }
   0x4   :  { %247 = vmatpush3.msra.mxu0 %v21_v2  ;;  %253 = vmatprep.subr.mxu1 %v292_v0  ;;  %v33_v10 = vld [vmem:[%s397_s3 + $0x48] sm:$0xff]  ;;  %v32_v11 = vld [vmem:[%s397_s3 + $0x40] sm:$0xff]  ;;  %v31_v12 = vld [vmem:[%s397_s3 + $0x38] sm:$0xff] }
   0x5   :  { %249 = vmatmul.mubr.msk.f32.vlgmr.msra.gmra.mxu0 %vm47_vm2, %v20_v3  ;;  %254 = vmatpush3.msra.mxu1 %v38_v5  ;;  %v30_v13 = vld [vmem:[%s397_s3 + $0x30] sm:$0xff]  ;;  %v29_v14 = vld [vmem:[%s397_s3 + $0x28] sm:$0xff]  ;;  %v28_v15 = vld [vmem:[%s397_s3 + $0x20] sm:$0xff] }
   0x6   :  { %255 = vmatprep.subr.mxu1 %v292_v0  ;;  %283 = vmatprep.mubr.msk.f32.mxu1 %vm293_vm1, %v292_v0  ;;  %v27_v16 = vld [vmem:[%s397_s3 + $0x18] sm:$0xff]  ;;  %v26_v17 = vld [vmem:[%s397_s3 + $0x10] sm:$0xff]  ;;  %v25_v18 = vld [vmem:[%s397_s3 + $0x8] sm:$0xff] }
   0x7   :  { %256 = vmatpush3.msra.mxu1 %v37_v6  ;;  %v24_v19 = vld [vmem:[%s397_s3] sm:$0xff] }
   0x8   :  { %257 = vmatprep.subr.mxu1 %v292_v0  ;;  %v220_v20 = vld [vmem:[%s398_s2] ss:$0 sm:$0xff] }
   0x9   :  { %258 = vmatpush3.msra.mxu1 %v36_v7  ;;  %v223_v25 = vld [vmem:[%s399_s4] ss:$0 sm:$0xff] }
   0xa   :  { %259 = vmatprep.subr.mxu1 %v292_v0 }
   0xb   :  { %260 = vmatpush3.msra.mxu1 %v35_v8 }
   0xc   :  { %261 = vmatprep.subr.mxu1 %v292_v0 }
   0xd   :  { %262 = vmatpush3.msra.mxu1 %v34_v9 }
   0xe   :  { %263 = vmatprep.subr.mxu1 %v292_v0 }
   0xf   :  { %264 = vmatpush3.msra.mxu1 %v33_v10 }
  0x10   :  { %265 = vmatprep.subr.mxu1 %v292_v0 }
  0x11   :  { %266 = vmatpush3.msra.mxu1 %v32_v11 }
  0x12   :  { %267 = vmatprep.subr.mxu1 %v292_v0 }
  0x13   :  { %268 = vmatpush3.msra.mxu1 %v31_v12 }
  0x14   :  { %269 = vmatprep.subr.mxu1 %v292_v0 }
  0x15   :  { %270 = vmatpush3.msra.mxu1 %v30_v13 }
  0x16   :  { %271 = vmatprep.subr.mxu1 %v292_v0 }
  0x17   :  { %272 = vmatpush3.msra.mxu1 %v29_v14 }
  0x18   :  { %273 = vmatprep.subr.mxu1 %v292_v0 }
  0x19   :  { %274 = vmatpush3.msra.mxu1 %v28_v15 }
  0x1a   :  { %275 = vmatprep.subr.mxu1 %v292_v0 }
  0x1b   :  { %276 = vmatpush3.msra.mxu1 %v27_v16 }
  0x1c   :  { %277 = vmatprep.subr.mxu1 %v292_v0 }
  0x1d   :  { %278 = vmatpush3.msra.mxu1 %v26_v17 }
  0x1e   :  { %279 = vmatprep.subr.mxu1 %v292_v0 }
  0x1f   :  { %280 = vmatpush3.msra.mxu1 %v25_v18 }
  0x20   :  { %281 = vmatprep.subr.mxu1 %v292_v0 }
  0x21   :  { %282 = vmatpush3.msra.mxu1 %v24_v19 }
  0xc5   :  { %v121_v21 = vpop.f32.mrf.mxu0 }
  0xc6   :  { %v122_v22 = vadd.f32 %v220_v20, %v121_v21 }
  0xc7   :  { %v250_v23 = vpop.f32.mrf.mxu0 }
  0xc8   :  { %v125_v24 = vmax.f32 %v122_v22, 0.0 }
  0xca   :  { %284 = vmatmul.mubr.f32.vlgmr.msra.gmra.mxu1 %v125_v24 }
 0x18a   :  { %v198_v26 = vpop.f32.mrf.mxu1 }
 0x18b   :  { %v199_v27 = vadd.f32 %v223_v25, %v198_v26 }
 0x18c   :  { %v285_v28 = vpop.f32.mrf.mxu1 }
 0x18d   :  { %v202_v29 = vmul.f32 3.3333333, %v199_v27 }
 0x18f   :  { %v204_v30 = vsel %vm203_vm3, %v202_v29, -inf }
 0x190   :  { %205 = vmax.xlane.f32.xlu0 %v204_v30 }
 0x219   :  { %v206_v31 = vpop.xlane.xlu0 %205 }
 0x21a   :  { %v207_v32 = vsub.f32 %v202_v29, %v206_v31 }
 0x21c   :  { %v208_v33 = vmul.f32 1.442695, %v207_v32 }
 0x21e   :  { %288 = vpow2.f32 %v208_v33 }
 0x22b   :  { %v289_v34 = vpop.eup %288 }
 0x22c   :  { %v210_v35 = vsel %vm203_vm3, %v289_v34, 0.0 }
 0x22d   :  { %211 = vadd.xlane.f32.xlu0 %v210_v35 }
 0x2b6   :  { %v212_v36 = vpop.xlane.xlu0 %211 }
 0x2b7   :  { %290 = vrcp.f32 %v212_v36 }
 0x2c4   :  { %v291_v37 = vpop.eup %290 }
 0x2c5   :  { %v214_v38 = vmul.f32 %v291_v37, %v289_v34 }
 0x2c7   :  { %215 = vst.msk [vmem:[%s400_s5] sm:$0xff] %vm203_vm3, %v214_v38 }

</bundles_post_ra>
